<compile_context>
chip_gen: v5e
topology: v5e:2x2
jax: 0.10.0
libtpu: 0.0.40
codegen_flags: <defaults>
</compile_context>

<pallas_src>
import functools

import jax
import jax.numpy as jnp
from jax.experimental import pallas as pl
from jax.experimental.pallas import tpu as pltpu


_MIN_GRID_STEPS = 8  # keep both v7x TensorCores fed and the DMA pipeline deep


def _window_sum(xs, k, out_len):
    """xs: (n, C) f32 with n >= out_len + k - 1.

    Returns (out_len, C) with out[t] = sum_{i=0}^{k-1} xs[t + i].

    LSB-first binary decomposition of k interleaved with window doubling:
    each power-of-two partial sum is consumed (sliced into `acc`) before the
    next doubling overwrites it, so at most ~3 arrays (cur, acc, one transient)
    are live at any point — independent of k.
    """
    n = xs.shape[0]
    assert n >= out_len + k - 1 and out_len >= 1 and k >= 1

    acc = None
    cur = xs          # cur[t] = sum xs[t : t + w], current window size w
    w = 1
    off = 0
    rem = k
    while True:
        if rem & 1:
            term = cur[off:off + out_len]
            acc = term if acc is None else acc + term
            off += w
        rem >>= 1
        if rem == 0:
            break
        # Double the window: new cur[t] = sum xs[t : t + 2w].
        new_len = n - 2 * w + 1
        cur = cur[:new_len] + cur[w:w + new_len]
        w *= 2
    return acc


def _moving_avg_kernel(x_ref, res_ref, m_ref, *, kernel_size):
    """x_ref: (1, L, tC) input tile; res_ref/m_ref: (1, L, tC) outputs.

    Interior rows use the doubling window-sum directly on the x tile (no padded
    copy); only `pad` rows at each end are patched from tiny edge slabs built
    out of x[0] / x[L-1].  Everything stays in VMEM values; stores are full,
    lane/sublane-aligned tiles.
    """
    k = kernel_size
    pad = (k - 1) // 2

    x = x_ref[0].astype(jnp.float32)          # (L, tC)
    L, tC = x.shape
    inv_k = 1.0 / k

    if pad == 0:
        m = x
    elif L >= k:
        # Interior: output rows pad .. L-1-pad come straight from windows on x.
        interior = _window_sum(x, k, L - 2 * pad)
        # Boundary patches: windows for the first/last `pad` rows only touch the
        # first/last 2*pad rows of x plus `pad` replicated edge rows — tiny slabs.
        first = jnp.broadcast_to(x[0:1, :], (pad, tC))
        last = jnp.broadcast_to(x[L - 1:L, :], (pad, tC))
        top = _window_sum(jnp.concatenate([first, x[:2 * pad]], axis=0), k, pad)
        bot = _window_sum(jnp.concatenate([x[L - 2 * pad:], last], axis=0), k, pad)
        m = jnp.concatenate([top, interior, bot], axis=0) * inv_k
    else:
        # Degenerate L < k: every row touches both edges; slab is tiny anyway.
        first = jnp.broadcast_to(x[0:1, :], (pad, tC))
        last = jnp.broadcast_to(x[L - 1:L, :], (pad, tC))
        xp = jnp.concatenate([first, x, last], axis=0)        # (L + k - 1, tC)
        m = _window_sum(xp, k, L) * inv_k

    m_ref[0] = m.astype(m_ref.dtype)
    res_ref[0] = (x - m).astype(res_ref.dtype)


def _step_vmem_bytes(L, tc, in_itemsize, out_itemsize):
    """Per-grid-step VMEM footprint estimate.

    Double-buffered input + 2 double-buffered outputs + ~5 live f32 temporaries
    (x, cur, doubling transient, assembled m, res).  The restructured
    _window_sum keeps only O(1) arrays live, so this does NOT scale with k.
    """
    in_tile = L * tc * in_itemsize
    out_tile = L * tc * out_itemsize
    f32_tile = L * tc * 4
    return 2 * in_tile + 4 * out_tile + 5 * f32_tile


def _vmem_budget_bytes():
    """Per-generation VMEM budget for this kernel's scoped allocation."""
    try:
        cap = int(pltpu.get_tpu_info().vmem_capacity_bytes)
    except Exception:
        cap = 64 << 20   # assume the smallest per-core VMEM (v7x)
    # Leave headroom for Pallas-internal scratch / compiler spills; 48 MiB is
    # plenty for multi-MiB tiles and safe on v7x's 64 MiB/TC.
    return max(16 << 20, min((cap * 5) // 8, 48 << 20))


def _pick_c_tile(B, L, C, itemsize, vmem_budget, target_bytes=2 << 20):
    """Pick a lane-aligned C tile (~target_bytes input tile) that divides C."""
    if C % 128 != 0:
        # Block last dim must be a multiple of 128 or the full dim — can't
        # lane-tile.  For small C this path is masked-store / overhead bound;
        # if hot, fix the model-level layout (put L on the lane axis) instead
        # of paying a per-call transpose here.
        return C

    def prev_divisor(t):
        t -= 128
        while t > 128 and C % t != 0:
            t -= 128
        return t

    tc = (target_bytes // max(1, L * itemsize)) // 128 * 128
    tc = max(128, min(tc, C))
    while C % tc != 0:
        tc -= 128

    # Guarantee enough grid steps for megacore sharding + pipeline overlap.
    while tc > 128 and B * (C // tc) < _MIN_GRID_STEPS:
        tc = prev_divisor(tc)

    # Keep the per-step footprint inside the VMEM budget.
    while tc > 128 and _step_vmem_bytes(L, tc, itemsize, itemsize) > vmem_budget:
        tc = prev_divisor(tc)
    return tc


def moving_avg(x, kernel_size, stride=1, *, c_tile=None):
    """Pallas implementation of the PyTorch `moving_avg` module.

    Returns (res, m) with m = edge-replicated moving average along dim 1 and
    res = x - m, matching the PyTorch forward.  Only stride=1 with odd
    kernel_size is meaningful for the module (otherwise `x - m` would shape-
    mismatch in PyTorch as well).
    """
    assert stride == 1, "moving_avg module is used with stride=1"
    assert kernel_size >= 1 and kernel_size % 2 == 1, "kernel_size must be odd"

    B, L, C = x.shape
    budget = _vmem_budget_bytes()

    if c_tile is None:
        tC = _pick_c_tile(B, L, C, x.dtype.itemsize, budget)
    else:
        tC = int(c_tile)
        assert C % tC == 0 and (tC == C or tC % 128 == 0)

    est = _step_vmem_bytes(L, tC, x.dtype.itemsize, x.dtype.itemsize)
    vmem_limit = int(min(budget, max(16 << 20, (est * 3) // 2)))

    # TODO(synk): add L tiling with a (k-1)-row halo (wrapper-gathered halo
    # slabs or manual DMA) for sequences where a full-L, 128-lane tile no
    # longer fits the VMEM budget (matters first on v7x's 64 MiB/TC).

    kernel = functools.partial(_moving_avg_kernel, kernel_size=kernel_size)

    res, m = pl.pallas_call(
        kernel,
        out_shape=(
            jax.ShapeDtypeStruct((B, L, C), x.dtype),   # res
            jax.ShapeDtypeStruct((B, L, C), x.dtype),   # m
        ),
        grid_spec=pltpu.PrefetchScalarGridSpec(
            num_scalar_prefetch=0,
            grid=(B, C // tC),
            in_specs=[
                pl.BlockSpec((1, L, tC), lambda b, c: (b, 0, c)),
            ],
            out_specs=[
                pl.BlockSpec((1, L, tC), lambda b, c: (b, 0, c)),
                pl.BlockSpec((1, L, tC), lambda b, c: (b, 0, c)),
            ],
        ),
        compiler_params=pltpu.CompilerParams(
            dimension_semantics=("parallel", "parallel"),
            vmem_limit_bytes=vmem_limit,
        ),
    )(x)
    return res, m


def _moving_avg_ref(x, kernel_size):
    """Pure-JAX reference mirroring the PyTorch forward exactly."""
    pad = (kernel_size - 1) // 2
    front = jnp.repeat(x[:, 0:1, :], pad, axis=1)
    end = jnp.repeat(x[:, -1:, :], pad, axis=1)
    mcat = jnp.concatenate([front, x, end], axis=1)   # (B, L + 2*pad, C)
    L = x.shape[1]
    windows = jnp.stack(
        [mcat[:, i:i + L, :] for i in range(kernel_size)], axis=0
    )
    m = jnp.mean(windows, axis=0)
    return x - m, m


if __name__ == "__main__":
    key = jax.random.PRNGKey(0)
    k1, k2, k3 = jax.random.split(key, 3)

    # Case 1: module-typical small shape, C not lane-aligned (full-C tile path).
    x1 = jax.random.normal(k1, (2, 8, 32), dtype=jnp.float32)
    res1, m1 = moving_avg(x1, kernel_size=5, stride=1)
    jax.block_until_ready((res1, m1))
    r1_ref, m1_ref = _moving_avg_ref(x1, 5)
    assert res1.shape == x1.shape and m1.shape == x1.shape
    assert jnp.allclose(m1, m1_ref, atol=1e-5, rtol=1e-5)
    assert jnp.allclose(res1, r1_ref, atol=1e-5, rtol=1e-5)

    # Case 2: lane-aligned C with forced 2-way lane tiling (exercises the
    # tiled grid path and the non-power-of-two doubling decomposition).
    x2 = jax.random.normal(k2, (2, 16, 256), dtype=jnp.float32)
    res2, m2 = moving_avg(x2, kernel_size=7, stride=1, c_tile=128)
    jax.block_until_ready((res2, m2))
    r2_ref, m2_ref = _moving_avg_ref(x2, 7)
    assert jnp.allclose(m2, m2_ref, atol=1e-5, rtol=1e-5)
    assert jnp.allclose(res2, r2_ref, atol=1e-5, rtol=1e-5)

    # Case 3: the common 25-tap decomposition window (bits 16+8+1) with
    # boundary patching on both ends.
    x3 = jax.random.normal(k3, (1, 32, 128), dtype=jnp.float32)
    res3, m3 = moving_avg(x3, kernel_size=25, stride=1)
    jax.block_until_ready((res3, m3))
    r3_ref, m3_ref = _moving_avg_ref(x3, 25)
    assert jnp.allclose(m3, m3_ref, atol=1e-5, rtol=1e-5)
    assert jnp.allclose(res3, r3_ref, atol=1e-5, rtol=1e-5)

    print("KERNEL_OK")
</pallas_src>

<mosaic_0001>
module attributes {stable_mosaic.version = 11 : i64} {
  func.func @_moving_avg_kernel(%arg0: i32, %arg1: i32, %arg2: memref<1x8x32xf32, #tpu.memory_space<vmem>>, %arg3: memref<1x8x32xf32, #tpu.memory_space<vmem>>, %arg4: memref<1x8x32xf32, #tpu.memory_space<vmem>>) attributes {dimension_semantics = [#tpu.dimension_semantics<parallel>, #tpu.dimension_semantics<parallel>], iteration_bounds = array<i64: 2, 1>, scalar_prefetch = 0 : i64, scratch_operands = 0 : i64, tpu.core_type = #tpu.core_type<tc>, window_params = [{transform_indices = @transform_0, window_bounds = array<i64: 1, 8, 32>}, {transform_indices = @transform_1, window_bounds = array<i64: 1, 8, 32>}, {transform_indices = @transform_2, window_bounds = array<i64: 1, 8, 32>}]} {
    %c0 = arith.constant 0 : index
    %c0_0 = arith.constant 0 : index
    %c0_1 = arith.constant 0 : index
    %0 = vector.load %arg2[%c0, %c0_0, %c0_1] : memref<1x8x32xf32, #tpu.memory_space<vmem>>, vector<1x8x32xf32>
    %1 = vector.shape_cast %0 : vector<1x8x32xf32> to vector<8x32xf32>
    %2 = vector.extract_strided_slice %1 {offsets = [0, 0], sizes = [4, 32], strides = [1, 1]} : vector<8x32xf32> to vector<4x32xf32>
    %3 = vector.extract_strided_slice %1 {offsets = [0, 0], sizes = [7, 32], strides = [1, 1]} : vector<8x32xf32> to vector<7x32xf32>
    %4 = vector.extract_strided_slice %1 {offsets = [1, 0], sizes = [7, 32], strides = [1, 1]} : vector<8x32xf32> to vector<7x32xf32>
    %5 = arith.addf %3, %4 : vector<7x32xf32>
    %6 = vector.extract_strided_slice %5 {offsets = [0, 0], sizes = [5, 32], strides = [1, 1]} : vector<7x32xf32> to vector<5x32xf32>
    %7 = vector.extract_strided_slice %5 {offsets = [2, 0], sizes = [5, 32], strides = [1, 1]} : vector<7x32xf32> to vector<5x32xf32>
    %8 = arith.addf %6, %7 : vector<5x32xf32>
    %9 = vector.extract_strided_slice %8 {offsets = [1, 0], sizes = [4, 32], strides = [1, 1]} : vector<5x32xf32> to vector<4x32xf32>
    %10 = arith.addf %2, %9 : vector<4x32xf32>
    %11 = vector.extract_strided_slice %1 {offsets = [0, 0], sizes = [1, 32], strides = [1, 1]} : vector<8x32xf32> to vector<1x32xf32>
    %12 = vector.shape_cast %11 : vector<1x32xf32> to vector<1x32xf32>
    %13 = vector.broadcast %12 : vector<1x32xf32> to vector<2x32xf32>
    %14 = vector.extract_strided_slice %1 {offsets = [7, 0], sizes = [1, 32], strides = [1, 1]} : vector<8x32xf32> to vector<1x32xf32>
    %15 = vector.shape_cast %14 : vector<1x32xf32> to vector<1x32xf32>
    %16 = vector.broadcast %15 : vector<1x32xf32> to vector<2x32xf32>
    %17 = vector.extract_strided_slice %1 {offsets = [0, 0], sizes = [4, 32], strides = [1, 1]} : vector<8x32xf32> to vector<4x32xf32>
    %18 = tpu.concatenate %13, %17 in 0 : vector<2x32xf32>, vector<4x32xf32> -> vector<6x32xf32>
    %19 = vector.extract_strided_slice %18 {offsets = [0, 0], sizes = [2, 32], strides = [1, 1]} : vector<6x32xf32> to vector<2x32xf32>
    %20 = vector.extract_strided_slice %18 {offsets = [0, 0], sizes = [5, 32], strides = [1, 1]} : vector<6x32xf32> to vector<5x32xf32>
    %21 = vector.extract_strided_slice %18 {offsets = [1, 0], sizes = [5, 32], strides = [1, 1]} : vector<6x32xf32> to vector<5x32xf32>
    %22 = arith.addf %20, %21 : vector<5x32xf32>
    %23 = vector.extract_strided_slice %22 {offsets = [0, 0], sizes = [3, 32], strides = [1, 1]} : vector<5x32xf32> to vector<3x32xf32>
    %24 = vector.extract_strided_slice %22 {offsets = [2, 0], sizes = [3, 32], strides = [1, 1]} : vector<5x32xf32> to vector<3x32xf32>
    %25 = arith.addf %23, %24 : vector<3x32xf32>
    %26 = vector.extract_strided_slice %25 {offsets = [1, 0], sizes = [2, 32], strides = [1, 1]} : vector<3x32xf32> to vector<2x32xf32>
    %27 = arith.addf %19, %26 : vector<2x32xf32>
    %28 = vector.extract_strided_slice %1 {offsets = [4, 0], sizes = [4, 32], strides = [1, 1]} : vector<8x32xf32> to vector<4x32xf32>
    %29 = tpu.concatenate %28, %16 in 0 : vector<4x32xf32>, vector<2x32xf32> -> vector<6x32xf32>
    %30 = vector.extract_strided_slice %29 {offsets = [0, 0], sizes = [2, 32], strides = [1, 1]} : vector<6x32xf32> to vector<2x32xf32>
    %31 = vector.extract_strided_slice %29 {offsets = [0, 0], sizes = [5, 32], strides = [1, 1]} : vector<6x32xf32> to vector<5x32xf32>
    %32 = vector.extract_strided_slice %29 {offsets = [1, 0], sizes = [5, 32], strides = [1, 1]} : vector<6x32xf32> to vector<5x32xf32>
    %33 = arith.addf %31, %32 : vector<5x32xf32>
    %34 = vector.extract_strided_slice %33 {offsets = [0, 0], sizes = [3, 32], strides = [1, 1]} : vector<5x32xf32> to vector<3x32xf32>
    %35 = vector.extract_strided_slice %33 {offsets = [2, 0], sizes = [3, 32], strides = [1, 1]} : vector<5x32xf32> to vector<3x32xf32>
    %36 = arith.addf %34, %35 : vector<3x32xf32>
    %37 = vector.extract_strided_slice %36 {offsets = [1, 0], sizes = [2, 32], strides = [1, 1]} : vector<3x32xf32> to vector<2x32xf32>
    %38 = arith.addf %30, %37 : vector<2x32xf32>
    %39 = tpu.concatenate %27, %10, %38 in 0 : vector<2x32xf32>, vector<4x32xf32>, vector<2x32xf32> -> vector<8x32xf32>
    %cst = arith.constant 2.000000e-01 : f32
    %40 = vector.broadcast %cst : f32 to vector<8x32xf32>
    %41 = arith.mulf %39, %40 : vector<8x32xf32>
    %c0_2 = arith.constant 0 : index
    %c0_3 = arith.constant 0 : index
    %c0_4 = arith.constant 0 : index
    %42 = vector.load %arg4[%c0_2, %c0_3, %c0_4] : memref<1x8x32xf32, #tpu.memory_space<vmem>>, vector<1x8x32xf32>
    %43 = vector.shape_cast %42 : vector<1x8x32xf32> to vector<8x32xf32>
    %44 = vector.shape_cast %41 : vector<8x32xf32> to vector<1x8x32xf32>
    tpu.vector_store %arg4[%c0_2, %c0_3, %c0_4], %44 {strides = array<i32>} : memref<1x8x32xf32, #tpu.memory_space<vmem>>, vector<1x8x32xf32>,
    %45 = arith.subf %1, %41 : vector<8x32xf32>
    %c0_5 = arith.constant 0 : index
    %c0_6 = arith.constant 0 : index
    %c0_7 = arith.constant 0 : index
    %46 = vector.load %arg3[%c0_5, %c0_6, %c0_7] : memref<1x8x32xf32, #tpu.memory_space<vmem>>, vector<1x8x32xf32>
    %47 = vector.shape_cast %46 : vector<1x8x32xf32> to vector<8x32xf32>
    %48 = vector.shape_cast %45 : vector<8x32xf32> to vector<1x8x32xf32>
    tpu.vector_store %arg3[%c0_5, %c0_6, %c0_7], %48 {strides = array<i32>} : memref<1x8x32xf32, #tpu.memory_space<vmem>>, vector<1x8x32xf32>,
    return
  }
  func.func @transform_0(%arg0: i32, %arg1: i32) -> (i32, i32, i32) {
    %c0_i32 = arith.constant 0 : i32
    %c0_i32_0 = arith.constant 0 : i32
    return %arg0, %c0_i32, %arg1 : i32, i32, i32
  }
  func.func @transform_1(%arg0: i32, %arg1: i32) -> (i32, i32, i32) {
    %c0_i32 = arith.constant 0 : i32
    %c0_i32_0 = arith.constant 0 : i32
    return %arg0, %c0_i32, %arg1 : i32, i32, i32
  }
  func.func @transform_2(%arg0: i32, %arg1: i32) -> (i32, i32, i32) {
    %c0_i32 = arith.constant 0 : i32
    %c0_i32_0 = arith.constant 0 : i32
    return %arg0, %c0_i32, %arg1 : i32, i32, i32
  }
}

</mosaic_0001>

<bundles_post_ra>
// kernel: tpu_custom_call.1
= control target key start
LH: loop header
LB: loop body
LE: loop exit
PB: predicated region body
PF: predicated region fallthrough
CT: control target
= control target key end

     0   :  { %8 = vsyncpa [#allocation3], 0  ;;  %s812_s0 = inlined_call_operand.hbm [shape: f32[2,8,32], index: 0, kind: input, shape index: {}]   ;;  %s813_s1 = inlined_call_operand.hbm [shape: f32[2,8,32], index: 1, kind: output, shape index: {0}]   ;;  %s814_s2 = inlined_call_operand.hbm [shape: f32[2,8,32], index: 2, kind: output, shape index: {1}]  }
   0x1   :  { %10 = vsyncpa [#allocation3 + $0x1], 0 }
   0x2   :  { %11 = vsyncpa [#allocation4], 0 }
   0x3   :  { %13 = vsyncpa [#allocation4 + $0x1], 0 }
   0x4   :  { %14 = vsyncpa [#allocation7], 0 }
   0x5   :  { %16 = vsyncpa [#allocation7 + $0x1], 0  ;;  %s647_s9 = smov 0   ;;  %s649_s10 = smov 0  }
   0x6   :  { %s651_s11 = smov 0   ;;  %s653_s12 = smov 0  }
   0x7   :  { %s655_s13 = smov 0   ;;  %s657_s14 = smov 0  }
   0x8 LB: > { %s403_s15 = sadd.s32 4294967295, %s630_s14   ;;  %s404_s16 = sadd.s32 4294967294, %s630_s14   ;;  %s630_s14 = sphi %s657_s14, %s22_s14   ;;  %s626_s13 = sphi %s655_s13, %s823_s13   ;;  %s622_s12 = sphi %s653_s12, %s822_s12   ;;  %s618_s11 = sphi %s651_s11, %s821_s11   ;;  %s614_s10 = sphi %s649_s10, %s820_s10   ;;  %s610_s9 = sphi %s647_s9, %s819_s9  }
   0x9   : > { %s34_s17 = sadd.s32 1, %s626_s13  ;;  %s43_s18 = sadd.s32 1, %s618_s11 }
   0xa   : > { %p36_p0 = scmp.ge.s32.totalorder %s34_s17, 2  ;;  %p50_p1 = scmp.ne.s32.totalorder %s618_s11, %s614_s10 }
   0xb   : > { %p51_p2 = scmp.eq.s32.totalorder %s630_s14, 0  ;;  %p56_p3 = scmp.ne.s32.totalorder %s614_s10, %s610_s9 }
   0xc   : > { %s825_s17 = smov (%p36_p0, %s34_s17), 0  ;;  %p57_p5 = scmp.eq.s32.totalorder %s403_s15, 0 }
   0xd   : > { %p688_p4 = por %p51_p2, %p50_p1  ;;  %s38_s20 = ssub.s32 %s626_s13, %s825_s17 }
   0xe   : > { %p82_p6 = scmp.eq.s32.totalorder %s403_s15, 1  ;;  %p41_p7 = scmp.eq.s32.totalorder %s38_s20, 0 }
   0xf   : > { %p694_p8 = por %p57_p5, %p56_p3  ;;  %p88_p10 = scmp.eq.s32.totalorder %s404_s16, 1 }
  0x10   : > { %p698_p9 = por %p82_p6, %p50_p1  ;;  %p406_p12 = scmp.ge.s32.totalorder %s630_s14, 2 }
  0x11   : > { %s703_s23 = scalar_select %p41_p7, %s618_s11, %s43_s18  }
  0x12   : > { %p705_p11 = por %p88_p10, %p56_p3  ;;  %p436_p13 = scmp.lt.s32.totalorder %s630_s14, 2 }
  0x13   : > { %s136_s25 = sand.u32 1, %s618_s11   ;;  %s408_s27 = sshll.u32 %s626_s13, 3 }
  0x14   : > { %s407_s26 = sshll.u32 %s136_s25, 3  ;;  %s145_s30 = scalar_lea.hbm %s812_s0, %s408_s27 }
  0x15   : > { %s140_s3 = scalar_lea.vmem [#allocation2], %s407_s26  ;;  %s147_s5 = sshll.u32 %s145_s30, 4  ;;  %s148_s5 = int_to_ptr.hbm [resolvable:$true] %s147_s5 }
  0x16   : > { %s149_s4 = sshll.u32 %s140_s3, 4  ;;  %p426_p0 = pnand %p436_p13, %p688_p4  ;;  %s150_s4 = int_to_ptr.vmem [resolvable:$true] %s149_s4 }
  0x17   : > { %p409_p1 = scmp.ge.s32.totalorder %s630_s14, 1  ;;  %p154_p2 = scmp.lt.s32.totalorder %s630_s14, 3 }
  0x18   : > { %s137_s6 = scalar_lea.sflag [#allocation3], %s136_s25 }
  0x19   : > { %428 = dma.hbm_to_vmem [thread:$0]  (!%p426_p0), %s148_s5, 128, %s150_s4, %s137_s6  }
  0x1a   : > { %p155_p3 = pnand %p409_p1, %p154_p2 }
  0x1b   : > { %s721_s7 = sand.u32 (!%p155_p3), 1, %s614_s10  }
  0x1c   : > { %158 = sbr.rel (%p155_p3) target bundleno = 71 (0x47), region = 24  ;;  %s724_s8 = sshll.u32 (!%p155_p3), %s721_s7, 3 }
  0x1d   : > { %s161_s15 = scalar_lea.sflag (!%p155_p3), [#allocation3], %s721_s7  ;;  %s164_s16 = scalar_lea.vmem (!%p155_p3), [#allocation2], %s724_s8 }
  0x21   : > { %597 = dma.done.wait (%p694_p8), %s161_s15, 128  }
  0x22   : > { %599 = vsyncadd (%p694_p8), %s161_s15, 4294967168  ;;  %v732_v0 = vld [vmem:[%s164_s16] sm:$0xff]  ;;  %vm208_vm0 = vcmask 1041408   ;;  %vm224_vm1 = vcmask 1043456   ;;  %s415_s18 = sshll.u32 %s622_s12, 3  ;;  %vm245_vm2 = vcmask 1045504  }
  0x23   : > { %v193_v1 = vrot.slane %v732_v0, 1  ;;  %v204_v2 = vperm.slane %v732_v0, 0  ;;  %v205_v3 = vperm.slane %v732_v0, 7  ;;  %v206_v4 = vrot.slane %v732_v0, 6  ;;  %s284_s21 = scalar_lea.hbm %s814_s2, %s415_s18  ;;  %s190_s25 = scalar_lea.vmem [#allocation6], %s724_s8 }
  0x24   : > { %v222_v5 = vrot.slane %v732_v0, 4  ;;  %s748_s26 = sshll.u32 %s190_s25, 4  ;;  %s269_s12 = scalar_lea.hbm %s813_s1, %s415_s18  ;;  %vm248_vm3 = vcmask 261120   ;;  %s287_s26 = int_to_ptr.vmem [resolvable:$true] %s748_s26 }
  0x25   : > { %v195_v6 = vadd.f32 %v193_v1, %v732_v0  ;;  %v209_v7 = vsel %vm208_vm0, %v204_v2, %v206_v4  ;;  %s288_s29 = sshll.u32 %s284_s21, 4  ;;  %s183_s30 = scalar_lea.vmem [#allocation5], %s724_s8  ;;  %s289_s29 = int_to_ptr.hbm [resolvable:$true] %s288_s29 }
  0x26   : > { %v211_v8 = vrot.slane %v209_v7, 1  ;;  %v225_v9 = vsel %vm224_vm1, %v222_v5, %v205_v3  ;;  %s754_s3 = sshll.u32 %s183_s30, 4  ;;  %s273_s4 = sshll.u32 %s269_s12, 4  ;;  %s272_s3 = int_to_ptr.vmem [resolvable:$true] %s754_s3  ;;  %s760_s4 = int_to_ptr.hbm [resolvable:$true] %s273_s4 }
  0x27   : > { %v197_v10 = vrot.slane %v195_v6, 2  ;;  %v227_v11 = vrot.slane %v225_v9, 1  ;;  %s258_s5 = scalar_lea.sflag [#allocation7], %s721_s7  ;;  %s530_s6 = sshra.s32 %s289_s29, 4  ;;  %s531_s6 = int_to_ptr.hbm [resolvable:$true] %s530_s6 }
  0x28   : > { %v213_v12 = vadd.f32 %v211_v8, %v209_v7  ;;  %s532_s8 = scalar_lea.hbm %s531_s6, 8  ;;  %s536_s18 = scalar_lea.hbm %s814_s2, 16 }
  0x29   : > { %v199_v13 = vadd.f32 %v197_v10, %v195_v6  ;;  %v229_v14 = vadd.f32 %v227_v11, %v225_v9  ;;  %p533_p4 = scmp.ne.s32.totalorder %s531_s6, %s532_s8  ;;  %p537_p7 = scmp.lt.s32.totalorder %s531_s6, %s814_s2 }
  0x2a   : > { %v215_v15 = vrot.slane %v213_v12, 2  ;;  %p538_p8 = scmp.lt.s32.totalorder %s536_s18, %s532_s8 }
  0x2b   : > { %v201_v16 = vrot.slane %v199_v13, 1  ;;  %v231_v17 = vrot.slane %v229_v14, 2  ;;  %p534_p5 = pnand %p533_p4, %p698_p9 }
  0x2c   : > { %v217_v18 = vadd.f32 %v215_v15, %v213_v12  ;;  %p539_p10 = por %p538_p8, %p537_p7 }
  0x2d   : > { %v203_v19 = vadd.f32 %v201_v16, %v732_v0  ;;  %v233_v20 = vadd.f32 %v231_v17, %v229_v14  ;;  %p535_p6 = pneg %p534_p5 }
  0x2e   : > { %v219_v21 = vrot.slane %v217_v18, 1 }
  0x2f   : > { %v235_v22 = vrot.slane %v233_v20, 1  ;;  %v239_v23 = vrot.slane %v203_v19, 6  ;;  %p540_p13 = pnand %p539_p10, %p535_p6 }
  0x30   : > { %v221_v24 = vadd.f32 %v219_v21, %v209_v7 }
  0x31   : > { %v237_v25 = vadd.f32 %v235_v22, %v225_v9 }
  0x32   : > { %v244_v26 = vsel %vm208_vm0, %v221_v24, %v239_v23 }
  0x33   : > { %v242_v27 = vrot.slane %v237_v25, 2 }
  0x35   : > { %v246_v28 = vsel %vm245_vm2, %v244_v26, %v242_v27 }
  0x36   : > { %v247_v29 = vmul.f32 0.2, %v246_v28 }
  0x38   : > { %249 = vst.msk [vmem:[%s190_s25] sm:$0xff] %vm248_vm3, %v247_v29  ;;  %v250_v30 = vsub.f32 %v732_v0, %v247_v29 }
  0x39   : > { %543 = shalt.err (!%p540_p13)
}
  0x3a   : > { %422 = dma.vmem_to_hbm [thread:$0]  (%p698_p9), %s287_s26, 128, %s289_s29, %s258_s5   ;;  %251 = vst.msk [vmem:[%s183_s30] sm:$0xff] %vm248_vm3, %v250_v30 }
  0x3b   : > { %s253_s21 = scalar_lea.sflag [#allocation4], %s721_s7  ;;  %s558_s25 = sshra.s32 %s760_s4, 4  ;;  %s559_s25 = int_to_ptr.hbm [resolvable:$true] %s558_s25 }
  0x3c   : > { %s560_s27 = scalar_lea.hbm %s559_s25, 8  ;;  %s564_s6 = scalar_lea.hbm %s813_s1, 16 }
  0x3d   : > { %p561_p0 = scmp.ne.s32.totalorder %s559_s25, %s560_s27  ;;  %p565_p3 = scmp.lt.s32.totalorder %s559_s25, %s813_s1 }
  0x3e   : > { %p566_p4 = scmp.lt.s32.totalorder %s564_s6, %s560_s27 }
  0x3f   : > { %p562_p1 = pnand %p561_p0, %p698_p9 }
  0x40   : > { %p567_p5 = por %p566_p4, %p565_p3 }
  0x41   : > { %p563_p2 = pneg %p562_p1 }
  0x43   : > { %p568_p6 = pnand %p567_p5, %p563_p2 }
  0x45   : > { %571 = shalt.err (!%p568_p6)
}
  0x46   : > { %421 = dma.vmem_to_hbm [thread:$0]  (%p698_p9), %s272_s3, 128, %s760_s4, %s253_s21  }
  0x47 PF: > { %s300_s7 = sand.u32 1, %s610_s9   ;;  %p430_p7 = pnand %p406_p12, %p705_p11 }
  0x48   : > { %s301_s26 = scalar_lea.sflag [#allocation4], %s300_s7 }
  0x49   : > { %p431_p8 = pneg %p430_p7 }
  0x4b   : > { %601 = dma.done.wait (%p431_p8), %s301_s26, 128  }
  0x4c   : > { %603 = vsyncadd (%p431_p8), %s301_s26, 4294967168  ;;  %s311_s29 = scalar_lea.sflag [#allocation7], %s300_s7 }
  0x4d   : > { %605 = dma.done.wait (%p431_p8), %s311_s29, 128  }
  0x4e   : > { %607 = vsyncadd (%p431_p8), %s311_s29, 4294967168  ;;  %s22_s14 = sadd.s32 1, %s630_s14   ;;  %s819_s9 = smov %s614_s10 }
  0x4f   : > { %p19_p10 = scmp.ge.s32.totalorder %s22_s14, 4   ;;  %s820_s10 = smov %s618_s11 }
  0x50   : > { %s821_s11 = smov %s703_s23  ;;  %s822_s12 = smov %s626_s13 }
  0x51   : > { %s823_s13 = smov %s825_s17  ;;  %21 = sbr.rel (!%p19_p10) target bundleno = 8 (0x8), region = 86 }
  0x56   :  { %317 = vsyncpa [#allocation3], 1 }
  0x57   :  { %319 = vsyncpa [#allocation3 + $0x1], 1 }
  0x58   :  { %320 = vsyncpa [#allocation4], 1 }
  0x59   :  { %322 = vsyncpa [#allocation4 + $0x1], 1 }
  0x5a   :  { %323 = vsyncpa [#allocation7], 1 }
  0x5b   :  { %325 = vsyncpa [#allocation7 + $0x1], 1 }

</bundles_post_ra>
